<compile_context>
chip_gen: v5e
topology: v5e:2x2
jax: 0.10.0
libtpu: 0.0.40
codegen_flags: <defaults>
</compile_context>

<pallas_src>
import jax
import jax.numpy as jnp
import numpy as np
from jax.experimental import pallas as pl
from jax.experimental.pallas import tpu as pltpu

D = 1024            # hidden size fixed by nn.Linear(1024, 1)
SUB, LANE = 8, 128  # 8 * 128 == 1024 -> one f32 vreg tile


def fc_sigmoid_kernel(row_ref, x_ref, w_ref, b_ref, o_ref):
    """row_ref: (1,) i32 SMEM scalar-prefetch (used only by index_maps);
    x_ref: (8,128) f32 VMEM (the [0,-1] row, DMA'd straight from HBM);
    w_ref: (8,128) f32 VMEM; b_ref: (1,) f32 SMEM; o_ref: (1,128) f32 VMEM."""
    del row_ref                                     # consumed by the index_map only
    x = x_ref[...].astype(jnp.float32)              # (8, 128) whole-tile vld
    w = w_ref[...].astype(jnp.float32)              # (8, 128)  (keep f32 for v5e)
    prod = x * w                                    # elementwise multiply, VPU
    s = jnp.sum(prod, axis=1, keepdims=True)        # (8, 1)  cross-lane reduce (XLU)
    s = jnp.sum(s, axis=0, keepdims=True)           # (1, 1)  cross-sublane reduce
    y = jax.nn.sigmoid(s + b_ref[0])                # bias + sigmoid (EUP), (1, 1)
    # Lane-dense store: broadcast scalar across 128 lanes -> unmasked lane write.
    o_ref[...] = jnp.broadcast_to(y, (1, LANE))


@jax.jit
def hubert_classifier_forward(last_hidden_state, fc_weight, fc_bias):
    """last_hidden_state: (B, T, D) f32; fc_weight: (1, D); fc_bias: (1,). Returns (1,)."""
    B, T, Dh = last_hidden_state.shape
    assert Dh == D, "Hubert_Classifier.fc expects hidden size 1024"
    assert last_hidden_state.dtype == jnp.float32, (
        "kernel expects float32 hidden states (bf16 would break the (8,128) tile)")

    # Metadata-only (row-major) reshape; the [0][-1] vector is flat row T-1.
    x3d = last_hidden_state.reshape(B * T, SUB, LANE)
    row_idx = jnp.array([T - 1], dtype=jnp.int32)   # flat index of [0, -1] (scalar prefetch)
    w2d = fc_weight.reshape(SUB, LANE).astype(jnp.float32)
    b = fc_bias.reshape(1).astype(jnp.float32)

    cost = pl.CostEstimate(
        flops=2 * D,                                # 1024 mul + 1024 add
        transcendentals=1,                          # sigmoid
        bytes_accessed=2 * D * 4 + 4 + 4 + LANE * 4)

    out = pl.pallas_call(
        fc_sigmoid_kernel,
        out_shape=jax.ShapeDtypeStruct((1, LANE), jnp.float32),
        grid_spec=pltpu.PrefetchScalarGridSpec(
            num_scalar_prefetch=1,                  # row_idx lands in SMEM pre-grid
            grid=(1,),
            in_specs=[
                # One (8,128) tile fetched directly from the [B*T, 8, 128] view;
                # the row is picked by the prefetched scalar, leading dim squeezed.
                pl.BlockSpec((None, SUB, LANE), lambda i, row_ref: (row_ref[0], 0, 0)),
                # Whole weight tile.
                pl.BlockSpec((SUB, LANE), lambda i, row_ref: (0, 0)),
                # Bias scalar lives in SMEM.
                pl.BlockSpec(memory_space=pltpu.MemorySpace.SMEM),
            ],
            out_specs=pl.BlockSpec((1, LANE), lambda i, row_ref: (0, 0)),
        ),
        compiler_params=pltpu.CompilerParams(
            dimension_semantics=("arbitrary",)),
        cost_estimate=cost,
    )(row_idx, x3d, w2d, b)

    return out[0, :1]                               # matches torch output shape [1]


if __name__ == "__main__":
    key = jax.random.PRNGKey(0)
    k_x, k_w, k_b = jax.random.split(key, 3)

    B, T = 2, 8                                     # small; D must stay 1024
    last_hidden_state = jax.random.normal(k_x, (B, T, D), dtype=jnp.float32)
    # Deterministic synthetic fc params (nn.Linear(1024, 1): weight [1,1024], bias [1]).
    fc_weight = jax.random.normal(k_w, (1, D), dtype=jnp.float32) * 0.02
    fc_bias = jax.random.normal(k_b, (1,), dtype=jnp.float32) * 0.02

    out = hubert_classifier_forward(last_hidden_state, fc_weight, fc_bias)
    out = jax.block_until_ready(out)

    # Pure-JAX reference of the same math.
    ref = jax.nn.sigmoid(last_hidden_state[0, -1] @ fc_weight[0] + fc_bias[0])
    assert out.shape == (1,)
    assert np.allclose(np.asarray(out), np.asarray(ref).reshape(1), rtol=1e-5, atol=1e-5)

    print("KERNEL_OK")
</pallas_src>

<mosaic_0001>
module attributes {stable_mosaic.version = 11 : i64} {
  func.func @fc_sigmoid_kernel(%arg0: i32, %arg1: memref<1xi32, #tpu.memory_space<smem>>, %arg2: memref<1x8x128xf32, #tpu.memory_space<vmem>>, %arg3: memref<8x128xf32, #tpu.memory_space<vmem>>, %arg4: memref<1xf32, #tpu.memory_space<smem>>, %arg5: memref<1x128xf32, #tpu.memory_space<vmem>>) attributes {dimension_semantics = [#tpu.dimension_semantics<arbitrary>], iteration_bounds = array<i64: 1>, scalar_prefetch = 1 : i64, scratch_operands = 0 : i64, tpu.core_type = #tpu.core_type<tc>, window_params = [{transform_indices = @transform_0, window_bounds = array<i64: 1, 8, 128>}, {pipeline_mode = #tpu.pipeline_mode<synchronous>, transform_indices = @transform_1, window_bounds = array<i64: 8, 128>}, {transform_indices = @transform_2, window_bounds = array<i64: 1>}, {pipeline_mode = #tpu.pipeline_mode<synchronous>, transform_indices = @transform_3, window_bounds = array<i64: 1, 128>}]} {
    %c0 = arith.constant 0 : index
    %c0_0 = arith.constant 0 : index
    %c0_1 = arith.constant 0 : index
    %0 = vector.load %arg2[%c0, %c0_0, %c0_1] : memref<1x8x128xf32, #tpu.memory_space<vmem>>, vector<1x8x128xf32>
    %1 = vector.shape_cast %0 : vector<1x8x128xf32> to vector<8x128xf32>
    %c0_2 = arith.constant 0 : index
    %c0_3 = arith.constant 0 : index
    %2 = vector.load %arg3[%c0_2, %c0_3] : memref<8x128xf32, #tpu.memory_space<vmem>>, vector<8x128xf32>
    %3 = arith.mulf %1, %2 : vector<8x128xf32>
    %cst = arith.constant dense<0.000000e+00> : vector<8xf32>
    %4 = vector.multi_reduction <add>, %3, %cst [1] : vector<8x128xf32> to vector<8xf32>
    %5 = vector.shape_cast %4 : vector<8xf32> to vector<8x1xf32>
    %cst_4 = arith.constant dense<0.000000e+00> : vector<1xf32>
    %6 = vector.multi_reduction <add>, %5, %cst_4 [0] : vector<8x1xf32> to vector<1xf32>
    %7 = vector.shape_cast %6 : vector<1xf32> to vector<1x1xf32>
    %c0_5 = arith.constant 0 : index
    %8 = memref.load %arg4[%c0_5] : memref<1xf32, #tpu.memory_space<smem>>
    %9 = vector.broadcast %8 : f32 to vector<1x1xf32>
    %10 = arith.addf %7, %9 : vector<1x1xf32>
    %11 = arith.negf %10 : vector<1x1xf32>
    %12 = math.exp %11 : vector<1x1xf32>
    %cst_6 = arith.constant 1.000000e+00 : f32
    %13 = vector.broadcast %cst_6 : f32 to vector<1x1xf32>
    %14 = arith.addf %13, %12 : vector<1x1xf32>
    %15 = arith.divf %13, %14 : vector<1x1xf32>
    %16 = vector.shape_cast %15 : vector<1x1xf32> to vector<1x1xf32>
    %17 = vector.broadcast %16 : vector<1x1xf32> to vector<1x128xf32>
    %c0_7 = arith.constant 0 : index
    %c0_8 = arith.constant 0 : index
    %18 = vector.load %arg5[%c0_7, %c0_8] : memref<1x128xf32, #tpu.memory_space<vmem>>, vector<1x128xf32>
    tpu.vector_store %arg5[%c0_7, %c0_8], %17 {strides = array<i32>} : memref<1x128xf32, #tpu.memory_space<vmem>>, vector<1x128xf32>,
    return
  }
  func.func @transform_0(%arg0: i32, %arg1: memref<1xi32, #tpu.memory_space<smem>>) -> (i32, i32, i32) {
    %c0 = arith.constant 0 : index
    %0 = memref.load %arg1[%c0] : memref<1xi32, #tpu.memory_space<smem>>
    %c0_i32 = arith.constant 0 : i32
    %c0_i32_0 = arith.constant 0 : i32
    %c0_i32_1 = arith.constant 0 : i32
    return %0, %c0_i32, %c0_i32_0 : i32, i32, i32
  }
  func.func @transform_1(%arg0: i32, %arg1: memref<1xi32, #tpu.memory_space<smem>>) -> (i32, i32) {
    %c0_i32 = arith.constant 0 : i32
    %c0_i32_0 = arith.constant 0 : i32
    %c0_i32_1 = arith.constant 0 : i32
    return %c0_i32, %c0_i32_0 : i32, i32
  }
  func.func @transform_2(%arg0: i32, %arg1: memref<1xi32, #tpu.memory_space<smem>>) -> i32 {
    %c0_i32 = arith.constant 0 : i32
    %c0_i32_0 = arith.constant 0 : i32
    return %c0_i32 : i32
  }
  func.func @transform_3(%arg0: i32, %arg1: memref<1xi32, #tpu.memory_space<smem>>) -> (i32, i32) {
    %c0_i32 = arith.constant 0 : i32
    %c0_i32_0 = arith.constant 0 : i32
    %c0_i32_1 = arith.constant 0 : i32
    return %c0_i32, %c0_i32_0 : i32, i32
  }
}

</mosaic_0001>

<bundles_post_ra>
// kernel: hubert_classifier_forward.1
= control target key start
LH: loop header
LB: loop body
LE: loop exit
PB: predicated region body
PF: predicated region fallthrough
CT: control target
= control target key end

     0   :  { %s168_s0 = inlined_call_operand.<no memory space> [shape: s32[1], index: 0, kind: input, shape index: {}]   ;;  %s169_s1 = inlined_call_operand.vmem [shape: f32[16,8,128], index: 1, kind: input, shape index: {}]   ;;  %s170_s2 = inlined_call_operand.vmem [shape: f32[8,128], index: 2, kind: input, shape index: {}]   ;;  %s171_s3 = inlined_call_operand.<no memory space> [shape: f32[1], index: 3, kind: input, shape index: {}]   ;;  %s172_s4 = inlined_call_operand.hbm [shape: f32[1,128], index: 4, kind: output, shape index: {}]  }
   0x1   :  { %p30_p0 = scmp.lt.s32.totalorder %s168_s0, 15 }
   0x2   :  { %11 = vsyncpa [#allocation6], 0  ;;  %v36_v0 = vld [vmem:[%s170_s2] sm:$0xff]  ;;  %v47_v9 = vstv %s171_s3  ;;  %s76_s3 = sshll.u32 %s172_s4, 4  ;;  %s77_s3 = int_to_ptr.hbm [resolvable:$true] %s76_s3 }
   0x3   :  { %s174_s0 = smov (!%p30_p0, %s168_s0), 15 }
   0x4   :  { %s91_s19 = sshll.u32 %s174_s0, 3  ;;  %s124_s0 = smov [#allocation5]  }
   0x5   :  { %s33_s24 = scalar_lea.vmem %s169_s1, %s91_s19  ;;  %s74_s1 = sshll.u32 %s124_s0, 4  ;;  %s75_s1 = int_to_ptr.vmem [resolvable:$true] %s74_s1 }
   0x6   :  { %v35_v1 = vld [vmem:[%s33_s24] sm:$0xff] }
   0x7   :  { %v37_v2 = vmul.f32 %v36_v0, %v35_v1 }
   0x9   :  { %38 = vadd.xlane.f32.xlu0 %v37_v2 }
  0x7c   :  { %v39_v3 = vpop.xlane.xlu0 %38 }
  0x7d   :  { %v40_v4 = vrot.slane %v39_v3, 4 }
  0x7f   :  { %v41_v5 = vadd.f32 %v40_v4, %v39_v3 }
  0x81   :  { %v42_v6 = vrot.slane %v41_v5, 2 }
  0x83   :  { %v43_v7 = vadd.f32 %v42_v6, %v41_v5 }
  0x85   :  { %v44_v8 = vrot.slane %v43_v7, 1 }
  0x87   :  { %v45_v10 = vadd.f32 %v44_v8, %v43_v7 }
  0x89   :  { %v48_v11 = vadd.f32 %v47_v9, %v45_v10 }
  0x8b   :  { %v92_v12 = vmul.f32 -1.442695, %v48_v11 }
  0x8d   :  { %94 = vpow2.f32 %v92_v12 }
  0x93   :  { %v95_v13 = vpop.eup %94 }
  0x94   :  { %v52_v14 = vadd.f32 1.0, %v95_v13 }
  0x96   :  { %96 = vrcp.f32 %v52_v14  ;;  %v64_v18 = vand.u32 2147483648, %v52_v14  ;;  %v62_v20 = vand.u32 2147483647, %v52_v14  ;;  %vm58_vm1 = vweird.f32 %v52_v14 }
  0x98   :  { %v65_v22 = vor.u32 1.1754944e-38, %v64_v18  ;;  %vm63_vm3 = vcmp.eq.f32.partialorder %v62_v20, 8.507059e+37 }
  0x9c   :  { %v97_v15 = vpop.eup %96 }
  0x9d   :  { %v54_v16 = vmul.f32 %v97_v15, %v52_v14  ;;  %vm59_vm0 = vweird.f32 %v97_v15 }
  0x9e   :  { %vm60_vm2 = vmor %vm58_vm1, %vm59_vm0 }
  0x9f   :  { %v55_v17 = vsub.f32 1.0, %v54_v16 }
  0xa1   :  { %v56_v19 = vmul.f32 %v97_v15, %v55_v17 }
  0xa3   :  { %v57_v21 = vadd.f32 %v97_v15, %v56_v19 }
  0xa5   :  { %v61_v23 = vsel %vm60_vm2, %v97_v15, %v57_v21 }
  0xa6   :  { %v66_v24 = vsel %vm63_vm3, %v65_v22, %v61_v23 }
  0xa7   :  { %68 = vst [vmem:[#allocation5] sm:$0x1] %v66_v24 }
  0xa8   :  { %79 = dma.vmem_to_hbm [thread:$0]  %s75_s1, 16, %s77_s3, [#allocation6]  }
  0xa9   :  { %122 = dma.done.wait [#allocation6], 16  }
  0xaa   :  { %123 = vsyncadd [#allocation6], 4294967280 }
  0xab   :  { %84 = vsyncpa [#allocation6], 1 }

</bundles_post_ra>
